<compile_context>
chip_gen: v7x
topology: tpu7x:2x2x1
jax: 0.10.0
libtpu: 0.0.40
codegen_flags: <defaults>
</compile_context>

<pallas_src>
import math
import functools

import jax
import jax.numpy as jnp
from jax import lax
from jax.experimental import pallas as pl
from jax.experimental.pallas import tpu as pltpu


def _round_up(x, m):
    return (x + m - 1) // m * m


def _l2_normalize_f32(v):
    # == F.normalize(v, dim=1, eps=1e-12) in f32:
    #    v / max(||v||, 1e-12) == v * rsqrt(max(sum(v*v), 1e-24))
    ss = jnp.sum(v * v, axis=1, keepdims=True)
    return v * lax.rsqrt(jnp.maximum(ss, 1e-24))


def arcface_kernel(x_ref, w_ref, label_ref, o_ref, *,
                   s, cos_m, sin_m, th, mm, easy_margin, tn):
    """One (class_tile, batch_tile) grid step.

    x_ref:     (bm, IN)  pre-normalized rows (matmul dtype, bf16 by default).
    w_ref:     (tn, IN)  pre-normalized weight tile (matmul dtype).
    label_ref: (bm, 1)   int32 (padded rows hold -1).
    o_ref:     (bm, tn)  scaled logits.
    """
    j = pl.program_id(0)                                     # class-tile index

    # cosine = xn @ wn^T: contract the last (feature) dim of BOTH operands so
    # the MXU is fed directly (no transposed weight copy); f32 accumulation.
    cosine = lax.dot_general(
        x_ref[...], w_ref[...],
        dimension_numbers=(((1,), (1,)), ((), ())),
        preferred_element_type=jnp.float32)                  # (bm, tn) f32
    cosine = jnp.clip(cosine, -1.0, 1.0)

    sine = jnp.sqrt(jnp.clip(1.0 - cosine * cosine, 1e-9, 1.0))
    phi = cosine * cos_m - sine * sin_m
    if easy_margin:
        phi = jnp.where(cosine > 0.0, phi, cosine)
    else:
        phi = jnp.where(cosine > th, phi, cosine - mm)

    # one_hot via (1, tn) column iota vs. (label - tile offset) broadcast.
    col = lax.broadcasted_iota(jnp.int32, (1, tn), 1)        # (1, tn)
    tgt = label_ref[...] - j * tn                            # (bm, 1)
    o_ref[...] = (jnp.where(col == tgt, phi, cosine) * s).astype(o_ref.dtype)


def arcface_forward(x, weight, label, *, s=30.0, m=0.5, easy_margin=False,
                    tn=1024, bm_max=512,
                    matmul_dtype=jnp.bfloat16, out_dtype=jnp.float32):
    B, in_features = x.shape
    out_features, in_features_w = weight.shape
    assert in_features_w == in_features
    assert tn % 128 == 0

    cos_m = math.cos(m)
    sin_m = math.sin(m)
    th = math.cos(math.pi - m)
    mm = math.sin(math.pi - m) * m

    matmul_dtype = jnp.dtype(matmul_dtype)
    out_dtype = jnp.dtype(out_dtype)
    sub = 16 if matmul_dtype.itemsize < 4 else 8   # sublane pack for bf16

    # Hoisted normalization (f32, once), then cast to the streaming dtype.
    xn = _l2_normalize_f32(x.astype(jnp.float32))
    wn = _l2_normalize_f32(weight.astype(jnp.float32))

    # Class-axis tiling (lane-dense, big tiles -> near HBM roofline).
    tn_eff = min(tn, _round_up(out_features, 128))
    c_pad = _round_up(out_features, tn_eff)

    # Batch-axis tiling; prefer a single batch tile so W is streamed once.
    bm = min(_round_up(bm_max, sub), _round_up(B, sub))
    b_pad = _round_up(B, bm)

    if c_pad != out_features:
        wn = jnp.pad(wn, ((0, c_pad - out_features), (0, 0)))
    label2d = label.reshape(B, 1).astype(jnp.int32)
    if b_pad != B:
        xn = jnp.pad(xn, ((0, b_pad - B), (0, 0)))
        label2d = jnp.pad(label2d, ((0, b_pad - B), (0, 0)), constant_values=-1)

    xn = xn.astype(matmul_dtype)
    wn = wn.astype(matmul_dtype)

    nb = b_pad // bm
    nc = c_pad // tn_eff

    kernel = functools.partial(
        arcface_kernel, s=s, cos_m=cos_m, sin_m=sin_m, th=th, mm=mm,
        easy_margin=easy_margin, tn=tn_eff)

    # Double-buffered I/O + in-kernel f32 elementwise temporaries, capped at
    # 40 MiB (v7x physical VMEM is 64 MiB; v5e scoped default is only 16 MiB).
    itm = matmul_dtype.itemsize
    est = (2 * (tn_eff * in_features * itm          # W tile
                + bm * in_features * itm            # x tile
                + bm * 1 * 4                        # label tile
                + bm * tn_eff * out_dtype.itemsize  # output tile
                )
           + 4 * bm * tn_eff * 4)                   # cosine/sine/phi/out temps
    vmem_limit = int(min(max(est + (2 << 20), 16 << 20), 40 << 20))

    out = pl.pallas_call(
        kernel,
        out_shape=jax.ShapeDtypeStruct((b_pad, c_pad), out_dtype),
        grid_spec=pltpu.PrefetchScalarGridSpec(
            num_scalar_prefetch=0,
            # Class-outer / batch-inner: the W block index depends only on the
            # outer axis, so the weight tile stays resident across batch tiles.
            grid=(nc, nb),
            in_specs=[
                pl.BlockSpec((bm, in_features), lambda j, i: (i, 0)),      # x
                pl.BlockSpec((tn_eff, in_features), lambda j, i: (j, 0)),  # W
                pl.BlockSpec((bm, 1), lambda j, i: (i, 0)),                # label
            ],
            out_specs=pl.BlockSpec((bm, tn_eff), lambda j, i: (i, j)),
        ),
        compiler_params=pltpu.CompilerParams(
            dimension_semantics=("parallel", "arbitrary"),
            vmem_limit_bytes=vmem_limit),
    )(xn, wn, label2d)

    if b_pad != B or c_pad != out_features:
        # NOTE: this slice is an extra XLA copy of the full output; for very
        # large class counts the consumer can keep the padded slab instead.
        out = out[:B, :out_features]
    return out


def arcface_reference(x, weight, label, *, s=30.0, m=0.5, easy_margin=False,
                      matmul_dtype=jnp.float32):
    cos_m, sin_m = math.cos(m), math.sin(m)
    th, mm = math.cos(math.pi - m), math.sin(math.pi - m) * m
    xn = x / jnp.maximum(jnp.linalg.norm(x, axis=1, keepdims=True), 1e-12)
    wn = weight / jnp.maximum(
        jnp.linalg.norm(weight, axis=1, keepdims=True), 1e-12)
    cosine = jnp.dot(xn.astype(matmul_dtype), wn.astype(matmul_dtype).T,
                     preferred_element_type=jnp.float32)
    cosine = jnp.clip(cosine, -1.0, 1.0)
    sine = jnp.sqrt(jnp.clip(1.0 - cosine ** 2, 1e-9, 1.0))
    phi = cosine * cos_m - sine * sin_m
    if easy_margin:
        phi = jnp.where(cosine > 0, phi, cosine)
    else:
        phi = jnp.where(cosine > th, phi, cosine - mm)
    one_hot = jax.nn.one_hot(label, cosine.shape[1], dtype=cosine.dtype)
    return (one_hot * phi + (1.0 - one_hot) * cosine) * s


if __name__ == "__main__":
    # Small shapes that exercise class tiling, ragged-class padding, and batch
    # tiling/padding: B=12, C=300 with tn=128 -> 3 class tiles (last padded).
    B, in_features, out_features = 12, 64, 300

    key = jax.random.PRNGKey(0)
    kx, kw, kl = jax.random.split(key, 3)

    x = jax.random.normal(kx, (B, in_features), dtype=jnp.float32)

    # xavier_uniform_ for weight of shape (out_features, in_features)
    bound = math.sqrt(6.0 / (in_features + out_features))
    weight = jax.random.uniform(
        kw, (out_features, in_features), dtype=jnp.float32,
        minval=-bound, maxval=bound)

    label = jax.random.randint(kl, (B,), 0, out_features, dtype=jnp.int32)

    ref_f32 = arcface_reference(x, weight, label, s=30.0, m=0.5,
                                easy_margin=False)

    # Exact-parity f32 streaming path (bm_max=8 -> 2 batch tiles).
    out_f32 = arcface_forward(x, weight, label, s=30.0, m=0.5,
                              easy_margin=False, tn=128, bm_max=8,
                              matmul_dtype=jnp.float32)
    out_f32 = jax.block_until_ready(out_f32)
    assert out_f32.shape == (B, out_features)
    assert jnp.allclose(out_f32, ref_f32, atol=1e-4, rtol=1e-4)

    # Default bf16 streaming path (halves W HBM traffic); compare against a
    # bf16-streaming reference (tight) and the f32 reference (loose).
    out_bf16 = arcface_forward(x, weight, label, s=30.0, m=0.5,
                               easy_margin=False, tn=128, bm_max=8)
    out_bf16 = jax.block_until_ready(out_bf16)
    ref_bf16 = arcface_reference(x, weight, label, s=30.0, m=0.5,
                                 easy_margin=False,
                                 matmul_dtype=jnp.bfloat16)
    assert out_bf16.shape == (B, out_features)
    assert jnp.allclose(out_bf16, ref_bf16, atol=1e-2, rtol=0)
    assert jnp.allclose(out_bf16, ref_f32, atol=0.3, rtol=0)

    print("KERNEL_OK")
</pallas_src>

<mosaic_0001>
module attributes {stable_mosaic.version = 11 : i64} {
  func.func @arcface_kernel(%arg0: i32, %arg1: i32, %arg2: memref<8x64xf32, #tpu.memory_space<vmem>>, %arg3: memref<128x64xf32, #tpu.memory_space<vmem>>, %arg4: memref<8x1xi32, #tpu.memory_space<vmem>>, %arg5: memref<8x128xf32, #tpu.memory_space<vmem>>) attributes {dimension_semantics = [#tpu.dimension_semantics<parallel>, #tpu.dimension_semantics<arbitrary>], iteration_bounds = array<i64: 3, 2>, scalar_prefetch = 0 : i64, scratch_operands = 0 : i64, tpu.core_type = #tpu.core_type<tc>, window_params = [{transform_indices = @transform_0, window_bounds = array<i64: 8, 64>}, {transform_indices = @transform_1, window_bounds = array<i64: 128, 64>}, {transform_indices = @transform_2, window_bounds = array<i64: 8, 1>}, {transform_indices = @transform_3, window_bounds = array<i64: 8, 128>}]} {
    %c0 = arith.constant 0 : index
    %c0_0 = arith.constant 0 : index
    %0 = vector.load %arg2[%c0, %c0_0] : memref<8x64xf32, #tpu.memory_space<vmem>>, vector<8x64xf32>
    %c0_1 = arith.constant 0 : index
    %c0_2 = arith.constant 0 : index
    %1 = vector.load %arg3[%c0_1, %c0_2] : memref<128x64xf32, #tpu.memory_space<vmem>>, vector<128x64xf32>
    %cst = arith.constant dense<0.000000e+00> : vector<8x128xf32>
    %2 = tpu.matmul %0, %1, %cst {dimension_numbers = #tpu.dot_dimension_numbers<[1], [1], [0], [0], [0, 0, 1, 0], [], []>} : vector<8x64xf32>, vector<128x64xf32>, vector<8x128xf32> -> vector<8x128xf32>
    %cst_3 = arith.constant -1.000000e+00 : f32
    %cst_4 = arith.constant 1.000000e+00 : f32
    %3 = vector.broadcast %cst_3 : f32 to vector<8x128xf32>
    %4 = arith.maximumf %3, %2 : vector<8x128xf32>
    %5 = vector.broadcast %cst_4 : f32 to vector<8x128xf32>
    %6 = arith.minimumf %5, %4 : vector<8x128xf32>
    %7 = arith.mulf %6, %6 : vector<8x128xf32>
    %cst_5 = arith.constant 1.000000e+00 : f32
    %8 = vector.broadcast %cst_5 : f32 to vector<8x128xf32>
    %9 = arith.subf %8, %7 : vector<8x128xf32>
    %cst_6 = arith.constant 9.99999971E-10 : f32
    %cst_7 = arith.constant 1.000000e+00 : f32
    %10 = vector.broadcast %cst_6 : f32 to vector<8x128xf32>
    %11 = arith.maximumf %10, %9 : vector<8x128xf32>
    %12 = vector.broadcast %cst_7 : f32 to vector<8x128xf32>
    %13 = arith.minimumf %12, %11 : vector<8x128xf32>
    %14 = math.sqrt %13 : vector<8x128xf32>
    %cst_8 = arith.constant 0.87758255 : f32
    %15 = vector.broadcast %cst_8 : f32 to vector<8x128xf32>
    %16 = arith.mulf %6, %15 : vector<8x128xf32>
    %cst_9 = arith.constant 0.47942555 : f32
    %17 = vector.broadcast %cst_9 : f32 to vector<8x128xf32>
    %18 = arith.mulf %14, %17 : vector<8x128xf32>
    %19 = arith.subf %16, %18 : vector<8x128xf32>
    %cst_10 = arith.constant -0.87758255 : f32
    %20 = vector.broadcast %cst_10 : f32 to vector<8x128xf32>
    %21 = arith.cmpf ogt, %6, %20 : vector<8x128xf32>
    %cst_11 = arith.constant 0.239712775 : f32
    %22 = vector.broadcast %cst_11 : f32 to vector<8x128xf32>
    %23 = arith.subf %6, %22 : vector<8x128xf32>
    %24 = arith.select %21, %19, %23 : vector<8x128xi1>, vector<8x128xf32>
    %25 = tpu.iota {dimensions = array<i32: 1>} : vector<1x128xi32>
    %c0_12 = arith.constant 0 : index
    %c0_13 = arith.constant 0 : index
    %26 = vector.load %arg4[%c0_12, %c0_13] : memref<8x1xi32, #tpu.memory_space<vmem>>, vector<8x1xi32>
    %c128_i32 = arith.constant 128 : i32
    %27 = arith.muli %arg0, %c128_i32 : i32
    %28 = vector.broadcast %27 : i32 to vector<8x1xi32>
    %29 = arith.subi %26, %28 : vector<8x1xi32>
    %30 = vector.broadcast %25 : vector<1x128xi32> to vector<8x128xi32>
    %31 = vector.broadcast %29 : vector<8x1xi32> to vector<8x128xi32>
    %32 = arith.cmpi eq, %30, %31 : vector<8x128xi32>
    %33 = arith.select %32, %24, %6 : vector<8x128xi1>, vector<8x128xf32>
    %cst_14 = arith.constant 3.000000e+01 : f32
    %34 = vector.broadcast %cst_14 : f32 to vector<8x128xf32>
    %35 = arith.mulf %33, %34 : vector<8x128xf32>
    %c0_15 = arith.constant 0 : index
    %c0_16 = arith.constant 0 : index
    %36 = vector.load %arg5[%c0_15, %c0_16] : memref<8x128xf32, #tpu.memory_space<vmem>>, vector<8x128xf32>
    tpu.vector_store %arg5[%c0_15, %c0_16], %35 {strides = array<i32>} : memref<8x128xf32, #tpu.memory_space<vmem>>, vector<8x128xf32>,
    return
  }
  func.func @transform_0(%arg0: i32, %arg1: i32) -> (i32, i32) {
    %c0_i32 = arith.constant 0 : i32
    %c0_i32_0 = arith.constant 0 : i32
    return %arg1, %c0_i32 : i32, i32
  }
  func.func @transform_1(%arg0: i32, %arg1: i32) -> (i32, i32) {
    %c0_i32 = arith.constant 0 : i32
    %c0_i32_0 = arith.constant 0 : i32
    return %arg0, %c0_i32 : i32, i32
  }
  func.func @transform_2(%arg0: i32, %arg1: i32) -> (i32, i32) {
    %c0_i32 = arith.constant 0 : i32
    %c0_i32_0 = arith.constant 0 : i32
    return %arg1, %c0_i32 : i32, i32
  }
  func.func @transform_3(%arg0: i32, %arg1: i32) -> (i32, i32) {
    %c0_i32 = arith.constant 0 : i32
    return %arg1, %arg0 : i32, i32
  }
}

</mosaic_0001>

<bundles_post_ra>
// kernel: tpu_custom_call.1
= control target key start
LH: loop header
LB: loop body
LE: loop exit
PB: predicated region body
PF: predicated region fallthrough
CT: control target
= control target key end

     0   :  { %8 = vsyncpa [#allocation3], 0  ;;  %s1011_s0 = inlined_call_operand.vmem [shape: f32[16,64], index: 0, kind: input, shape index: {}]   ;;  %s1012_s1 = inlined_call_operand.vmem [shape: f32[384,64], index: 1, kind: input, shape index: {}]   ;;  %s1013_s2 = inlined_call_operand.vmem [shape: s32[16,1], index: 2, kind: input, shape index: {}]   ;;  %s1014_s3 = inlined_call_operand.hbm [shape: f32[16,384], index: 3, kind: output, shape index: {}]  }
   0x1   :  { %10 = vsyncpa [#allocation3 + $0x1], 0  ;;  %s820_s12 = smov 0   ;;  %s822_s13 = smov 0  }
   0x2   :  { %s824_s14 = smov 0   ;;  %s826_s15 = smov 0  }
   0x3   :  { %s828_s16 = smov 0   ;;  %s830_s17 = smov 0  }
   0x4   :  { %s832_s18 = smov 0   ;;  %s834_s19 = smov 0  }
   0x5 LB: > { %s502_s20 = sadd.s32 4294967295, %s793_s19   ;;  %s503_s21 = sadd.s32 4294967294, %s793_s19   ;;  %s793_s19 = sphi %s834_s19, %s16_s19   ;;  %s789_s18 = sphi %s832_s18, %s1025_s18   ;;  %s785_s17 = sphi %s830_s17, %s1024_s17   ;;  %s781_s16 = sphi %s828_s16, %s1023_s16   ;;  %s777_s15 = sphi %s826_s15, %s1022_s15   ;;  %s773_s14 = sphi %s824_s14, %s1021_s14   ;;  %s769_s13 = sphi %s822_s13, %s1020_s13   ;;  %s765_s12 = sphi %s820_s12, %s1019_s12  }
   0x6   : > { %s25_s22 = sadd.s32 1, %s785_s17  ;;  %s28_s23 = sadd.s32 1, %s789_s18 }
   0x7   : > { %p26_p0 = scmp.ge.s32.totalorder %s25_s22, 2  ;;  %p125_p1 = scmp.ne.s32.totalorder %s773_s14, %s769_s13 }
   0x8   : > { %p126_p2 = scmp.eq.s32.totalorder %s502_s20, 5  ;;  %p131_p5 = scmp.ne.s32.totalorder %s769_s13, %s765_s12 }
   0x9   : > { %s1027_s22 = smov (%p26_p0, %s25_s22), 0  ;;  %s1029_s23 = smov (!%p26_p0, %s28_s23), %s789_s18 }
   0xa   : > { %s110_s24 = ssub.s32 %s785_s17, %s1027_s22  ;;  %p871_p3 = por %p126_p2, %p125_p1 }
   0xb   : > { %p30_p4 = scmp.ge.s32.totalorder %s1029_s23, 3  ;;  %p132_p6 = scmp.eq.s32.totalorder %s503_s21, 5 }
   0xc   : > { %p506_p7 = scmp.ge.s32.totalorder %s793_s19, 1  ;;  %p173_p9 = scmp.lt.s32.totalorder %s793_s19, 7 }
   0xd   : > { %s1031_s23 = smov (%p30_p4, %s1029_s23), 0  ;;  %p880_p8 = por %p132_p6, %p131_p5 }
   0xe   : > { %s111_s27 = ssub.s32 %s789_s18, %s1031_s23  ;;  %s115_s28 = sadd.s32 1, %s773_s14 }
   0xf   : > { %s112_s29 = sor.u32 %s111_s27, %s110_s24  ;;  %p174_p10 = pnand %p506_p7, %p173_p9 }
  0x10   : > { %p113_p11 = scmp.eq.s32.totalorder %s112_s29, 0  ;;  %s509_s4 = sshll.u32 (!%p174_p10), %s781_s16, 4  ;;  %v795_v0 = vmov (!%p174_p10), 0.0|0.0   ;;  %vm796_vm0 = vmmov (!%p174_p10), 0   ;;  %v797_v1 = vmov (!%p174_p10), 0.0   ;;  %v798_v2 = vmov (!%p174_p10), 0  }
  0x11   : > { %177 = sbr.rel (%p174_p10) target bundleno = 353 (0x161), region = 32  ;;  %p205_p12 = scmp.lt.s32.totalorder (!%p174_p10), %s777_s15, 1  ;;  %588 = vmatprep.subr.bf16.mxu0 (!%p174_p10), %v795_v0  ;;  %585 = vmatprep.mubr.msk.f32.mxu0 (!%p174_p10), %vm796_vm0, %v797_v1  ;;  %vm236_vm1 = vcmask (!%p174_p10), 523264   ;;  %v377_v39 = vlaneseq (!%p174_p10) }
  0x12   : > { %s889_s30 = scalar_select %p113_p11, %s773_s14, %s115_s28  }
  0x13   : > { %p210_p13 = scmp.lt.s32.totalorder (!%p174_p10), %s509_s4, 47  ;;  %696 = vset.pattern.permute.xlu0 (!%p174_p10), %v798_v2  ;;  %vm905_vm2 = vmpackc.low (!%p174_p10), %vm236_vm1, %vm236_vm1  ;;  %s531_s10 = sshll.u32 (!%p174_p10), %s781_s16, 7  ;;  %v378_v43 = vand.u32 (!%p174_p10), 127, %v377_v39 }
  0x14   : > { %v381_v7 = vstv (!%p174_p10), %s531_s10 }
  0x18   : > { %s1033_s4 = smov (!%p210_p13, %s509_s4), 47 }
  0x19   : > { %s894_s5 = scalar_select %p205_p12, %s777_s15, 1 }
  0x1a   : > { %s510_s6 = sshll.u32 %s1033_s4, 3  ;;  %s202_s4 = sand.u32 1, %s769_s13  }
  0x1b   : > { %s899_s9 = scalar_lea.vmem %s1012_s1, %s510_s6  ;;  %s508_s11 = sshll.u32 %s894_s5, 3 }
  0x1c   : > { %v220_v3 = vld [vmem:[%s899_s9] sm:$0xff]  ;;  %v221_v4 = vld [vmem:[%s899_s9 + $0x8] sm:$0xff]  ;;  %s218_s24 = scalar_lea.vmem %s1013_s2, %s508_s11  ;;  %v222_v8 = vld [vmem:[%s899_s9 + $0x10] sm:$0xff]  ;;  %s208_s29 = scalar_lea.vmem %s1011_s0, %s508_s11 }
  0x1d   : > { %v589_v6 = vpack.c.bf16 %v221_v4, %v220_v3  ;;  %v223_v9 = vld [vmem:[%s899_s9 + $0x18] sm:$0xff]  ;;  %v379_v10 = vld [vmem:[%s218_s24] sm:$0xff]  ;;  %v225_v14 = vld [vmem:[%s899_s9 + $0x28] sm:$0xff]  ;;  %s620_s5 = smul.u32 3, %s777_s15  ;;  %s507_s6 = sshll.u32 %s202_s4, 3 }
  0x1e   : > { %v382_v11 = vsub.s32 %v379_v10, %v381_v7  ;;  %v593_v12 = vpack.c.bf16 %v223_v9, %v222_v8  ;;  %v224_v13 = vld [vmem:[%s899_s9 + $0x20] sm:$0xff]  ;;  %v226_v16 = vld [vmem:[%s899_s9 + $0x30] sm:$0xff]  ;;  %v227_v17 = vld [vmem:[%s899_s9 + $0x38] sm:$0xff]  ;;  %s799_s24 = smov [#allocation2]  }
  0x1f   : > { %591 = vmatpush3.bf16.xpose.msk.msra.mxu0 %vm905_vm2, %v589_v6  ;;  %v597_v15 = vpack.c.bf16 %v225_v14, %v224_v13  ;;  %v601_v18 = vpack.c.bf16 %v227_v17, %v226_v16  ;;  %v228_v19 = vld [vmem:[%s899_s9 + $0x40] sm:$0xff]  ;;  %v229_v20 = vld [vmem:[%s899_s9 + $0x48] sm:$0xff]  ;;  %v230_v22 = vld [vmem:[%s899_s9 + $0x50] sm:$0xff]  ;;  %s402_s7 = sadd.s32 %s781_s16, %s620_s5  ;;  %s391_s16 = scalar_lea.sflag [#allocation3], %s202_s4 }
  0x20   : > { %592 = vmatprep.subr.bf16.mxu0 %v795_v0  ;;  %384 = vperm.xlu0 %696, %v382_v11   ;;  %v605_v21 = vpack.c.bf16 %v229_v20, %v228_v19  ;;  %v231_v23 = vld [vmem:[%s899_s9 + $0x58] sm:$0xff]  ;;  %v232_v25 = vld [vmem:[%s899_s9 + $0x60] sm:$0xff]  ;;  %v233_v26 = vld [vmem:[%s899_s9 + $0x68] sm:$0xff]  ;;  %s533_s8 = sshll.u32 %s402_s7, 7  ;;  %s703_s27 = sshll.u32 %s799_s24, 4  ;;  %s704_s27 = int_to_ptr.vmem [resolvable:$false] %s703_s27 }
  0x21   : > { %v609_v24 = vpack.c.bf16 %v231_v23, %v230_v22  ;;  %v613_v27 = vpack.c.bf16 %v233_v26, %v232_v25  ;;  %v234_v28 = vld [vmem:[%s899_s9 + $0x70] sm:$0xff]  ;;  %v235_v29 = vld [vmem:[%s899_s9 + $0x78] sm:$0xff]  ;;  %v219_v31 = vld [vmem:[%s208_s29] sm:$0xff]  ;;  %s204_s9 = scalar_lea.vmem [#allocation2], %s507_s6  ;;  %s958_s20 = scalar_lea.hbm %s1014_s3, %s533_s8 }
  0x22   : > { %v617_v30 = vpack.c.bf16 %v235_v29, %v234_v28  ;;  %s406_s10 = sshll.u32 %s204_s9, 4  ;;  %s705_s28 = scalar_lea.vmem %s704_s27, 256  ;;  %s960_s10 = int_to_ptr.vmem [resolvable:$true] %s406_s10 }
  0x23   : > { %s699_s21 = scalar_lea.vmem %s960_s10, 128  ;;  %p706_p4 = scmp.lt.s32.totalorder %s960_s10, %s704_s27 }
  0x24   : > { %p700_p0 = scmp.ne.s32.totalorder %s960_s10, %s699_s21  ;;  %p707_p5 = scmp.lt.s32.totalorder %s705_s28, %s699_s21 }
  0x26   : > { %p701_p1 = pnand %p700_p0, %p871_p3  ;;  %p708_p6 = por %p707_p5, %p706_p4 }
  0x27   : > { %595 = vmatpush3.bf16.xpose.msk.msra.mxu0 %vm905_vm2, %v593_v12 }
  0x28   : > { %596 = vmatprep.subr.bf16.mxu0 %v795_v0  ;;  %p702_p2 = pneg %p701_p1 }
  0x2a   : > { %p709_p7 = pnand %p708_p6, %p702_p2 }
  0x2f   : > { %599 = vmatpush3.bf16.xpose.msk.msra.mxu0 %vm905_vm2, %v597_v15 }
  0x30   : > { %600 = vmatprep.subr.bf16.mxu0 %v795_v0 }
  0x37   : > { %603 = vmatpush3.bf16.xpose.msk.msra.mxu0 %vm905_vm2, %v601_v18 }
  0x38   : > { %604 = vmatprep.subr.bf16.mxu0 %v795_v0 }
  0x3f   : > { %607 = vmatpush3.bf16.xpose.msk.msra.mxu0 %vm905_vm2, %v605_v21 }
  0x40   : > { %608 = vmatprep.subr.bf16.mxu0 %v795_v0 }
  0x47   : > { %611 = vmatpush3.bf16.xpose.msk.msra.mxu0 %vm905_vm2, %v609_v24 }
  0x48   : > { %612 = vmatprep.subr.bf16.mxu0 %v795_v0 }
  0x4f   : > { %615 = vmatpush3.bf16.xpose.msk.msra.mxu0 %vm905_vm2, %v613_v27 }
  0x50   : > { %616 = vmatprep.subr.bf16.mxu0 %v795_v0 }
  0x57   : > { %619 = vmatpush3.bf16.xpose.msk.msra.mxu0 %vm905_vm2, %v617_v30 }
  0x5e   : > { %586 = vmatmul.mubr.msk.f32.vlgmr.msra.gmra.mrb[0].mxu0 %vm236_vm1, %v219_v31 }
  0x9f   : > { %v385_v45 = vpop.permute.xlu0 %384 }
  0xa0   : > { %vm386_vm5 = vcmp.eq.s32.totalorder %v378_v43, %v385_v45 }
 0x131   : > { %v354_v32 = vpop.f32.mrb[0].mxu0 }
 0x132   : > { %v529_v33 = vclamps-f32 %v354_v32, 1.0  ;;  %v587_v34 = vpop.f32.mrb[1].mxu0 }
 0x134   : > { %v360_v35 = vmul.f32 %v529_v33, %v529_v33  ;;  %v371_v47 = vmul.f32 0.87758255, %v529_v33  ;;  %v530_v50 = vadd.f32 -0.23971277, %v529_v33  ;;  %vm374_vm6 = vcmp.gt.f32.partialorder %v529_v33, -0.87758255 }
 0x136   : > { %v361_v36 = vsub.f32 1.0, %v360_v35 }
 0x138   : > { %v362_v37 = vmax.f32 %v361_v36, 1e-09 }
 0x13a   : > { %v363_v38 = vmin.f32 %v362_v37, 1.0 }
 0x13c   : > { %697 = vrsqrt.f32 %v363_v38  ;;  %vm366_vm3 = vcmp.eq.f32.partialorder %v363_v38, inf  ;;  %v369_v42 = vand.u32 2147483648, %v363_v38  ;;  %vm368_vm4 = vcmp.eq.f32.partialorder %v363_v38, 0.0 }
 0x146   : > { %v698_v40 = vpop.eup %697 }
 0x147   : > { %v365_v41 = vmul.f32 %v698_v40, %v363_v38 }
 0x149   : > { %v367_v44 = vsel %vm366_vm3, %v363_v38, %v365_v41 }
 0x14a   : > { %v370_v46 = vsel %vm368_vm4, %v369_v42, %v367_v44 }
 0x14b   : > { %v372_v48 = vmul.f32 0.47942555, %v370_v46 }
 0x14d   : > { %v373_v49 = vsub.f32 %v371_v47, %v372_v48 }
 0x14f   : > { %v376_v51 = vsel %vm374_vm6, %v373_v49, %v530_v50 }
 0x150   : > { %v387_v52 = vsel %vm386_vm5, %v376_v51, %v529_v33 }
 0x151   : > { %v388_v53 = vmul.f32 30.0, %v387_v52 }
 0x153   : > { %389 = vst [vmem:[%s204_s9] sm:$0xff] %v388_v53 }
 0x154   : > { %712 = shalt.err (!%p709_p7)
}
 0x155   : > { %s713_s29 = scalar_lea.hbm %s958_s20, 128  ;;  %s717_s6 = scalar_lea.hbm %s1014_s3, 768 }
 0x156   : > { %p714_p9 = scmp.ne.s32.totalorder %s958_s20, %s713_s29  ;;  %p718_p12 = scmp.lt.u32.totalorder %s958_s20, %s1014_s3 }
 0x157   : > { %p719_p13 = scmp.lt.u32.totalorder %s717_s6, %s713_s29  ;;  %p721_p1 = scmp.lt.u32.totalorder %s713_s29, %s958_s20 }
 0x158   : > { %p715_p10 = pnand %p714_p9, %p871_p3 }
 0x159   : > { %p720_p0 = por %p719_p13, %p718_p12 }
 0x15a   : > { %p716_p11 = pneg %p715_p10 }
 0x15b   : > { %p722_p2 = por %p721_p1, %p720_p0 }
 0x15d   : > { %p723_p4 = pnand %p722_p2, %p716_p11 }
 0x15f   : > { %726 = shalt.err (!%p723_p4)
}
 0x160   : > { %621 = dma.vmem_to_hbm [thread:$0]  (%p871_p3), %s960_s10, 128, %s958_s20, %s391_s16  }
 0x161 PF: > { %p627_p5 = scmp.ge.s32.totalorder %s793_s19, 2  ;;  %s418_s9 = sand.u32 1, %s765_s12  }
 0x162   : > { %s419_s15 = scalar_lea.sflag [#allocation3], %s418_s9 }
 0x163   : > { %p624_p6 = pnand %p627_p5, %p880_p8 }
 0x165   : > { %760 = dma.done.wait (!%p624_p6), %s419_s15, 128  }
 0x166   : > { %762 = vsyncadd (!%p624_p6), %s419_s15, 4294967168  ;;  %s16_s19 = sadd.s32 1, %s793_s19   ;;  %s1019_s12 = smov %s769_s13 }
 0x167   : > { %p13_p7 = scmp.ge.s32.totalorder %s16_s19, 8   ;;  %s1020_s13 = smov %s773_s14 }
 0x168   : > { %s1021_s14 = smov %s889_s30  ;;  %s1022_s15 = smov %s785_s17 }
 0x169   : > { %s1023_s16 = smov %s789_s18  ;;  %s1024_s17 = smov %s1027_s22 }
 0x16a   : > { %s1025_s18 = smov %s1031_s23  ;;  %15 = sbr.rel (!%p13_p7) target bundleno = 5 (0x5), region = 73 }
 0x171   :  { %424 = vsyncpa [#allocation3], 1 }
 0x172   :  { %426 = vsyncpa [#allocation3 + $0x1], 1 }

</bundles_post_ra>
